<compile_context>
chip_gen: v6e
topology: v6e:2x2x1
jax: 0.10.0
libtpu: 0.0.40
codegen_flags: <defaults>
</compile_context>

<pallas_src>
import jax
import jax.numpy as jnp
from jax.experimental import pallas as pl
from jax.experimental.pallas import tpu as pltpu

IN_FEATURES = 32 * 7 * 7   # 1568
HIDDEN = 128
OUT = 1


def _round_up(n, m):
    return (n + m - 1) // m * m


def critic_kernel(x_ref, w1_ref, b1_ref, w2t_ref, b2_ref, o_ref):
    # fc1 on the MXU: bf16 @ bf16 with f32 accumulation.
    h = jnp.dot(x_ref[...], w1_ref[...], preferred_element_type=jnp.float32)
    h = h + b1_ref[...]                 # [1, HIDDEN] broadcast over batch tile
    h = jnp.maximum(h, 0.0)             # ReLU (VPU)
    # fc2 (N=1): multiply + lane reduction on VPU/XLU, MXU stays free for fc1.
    y = jnp.sum(h * w2t_ref[...], axis=-1, keepdims=True)
    y = y + b2_ref[0, 0]                # scalar bias read from SMEM
    o_ref[...] = y.astype(o_ref.dtype)


def critic_forward(x, w1, b1, w2, b2, *, tile_b=512):
    """x: [B, 1568] f32; w1: [1568, 128]; b1: [1, 128]; w2: [128, 1]; b2: [1, 1]."""
    B = x.shape[0]
    tile_b = min(tile_b, _round_up(max(B, 1), 8))   # keep tile a multiple of 8
    b_pad = _round_up(B, tile_b)
    num_tiles = b_pad // tile_b

    if b_pad != B:
        x = jnp.pad(x, ((0, b_pad - B), (0, 0)))

    # bf16 for the large operands; small params stay f32.
    x_bf = x.astype(jnp.bfloat16)
    w1_bf = w1.astype(jnp.bfloat16)
    b1_2d = jnp.reshape(b1, (1, HIDDEN)).astype(jnp.float32)
    w2t = jnp.reshape(w2, (HIDDEN, OUT)).T.astype(jnp.float32)   # [1, 128]
    b2_2d = jnp.reshape(b2, (1, 1)).astype(jnp.float32)

    out = pl.pallas_call(
        critic_kernel,
        out_shape=jax.ShapeDtypeStruct((b_pad, OUT), jnp.float32),
        grid=(num_tiles,),
        in_specs=[
            pl.BlockSpec((tile_b, IN_FEATURES), lambda i: (i, 0)),   # x: tiled over batch
            pl.BlockSpec((IN_FEATURES, HIDDEN), lambda i: (0, 0)),   # w1: resident
            pl.BlockSpec((1, HIDDEN), lambda i: (0, 0)),             # b1: resident
            pl.BlockSpec((1, HIDDEN), lambda i: (0, 0)),             # w2^T: resident
            pl.BlockSpec(memory_space=pltpu.MemorySpace.SMEM),       # b2: SMEM scalar
        ],
        out_specs=pl.BlockSpec((tile_b, OUT), lambda i: (i, 0)),
        compiler_params=pltpu.CompilerParams(
            dimension_semantics=("parallel",),
        ),
    )(x_bf, w1_bf, b1_2d, w2t, b2_2d)
    return out[:B]


def init_params(key):
    # Deterministic init mimicking nn.Linear's U(-1/sqrt(fan_in), 1/sqrt(fan_in)).
    k1, k2, k3, k4 = jax.random.split(key, 4)
    lim1 = 1.0 / jnp.sqrt(jnp.float32(IN_FEATURES))
    lim2 = 1.0 / jnp.sqrt(jnp.float32(HIDDEN))
    w1 = jax.random.uniform(k1, (IN_FEATURES, HIDDEN), jnp.float32, -lim1, lim1)
    b1 = jax.random.uniform(k2, (1, HIDDEN), jnp.float32, -lim1, lim1)
    w2 = jax.random.uniform(k3, (HIDDEN, OUT), jnp.float32, -lim2, lim2)
    b2 = jax.random.uniform(k4, (1, OUT), jnp.float32, -lim2, lim2)
    return w1, b1, w2, b2


if __name__ == "__main__":
    key = jax.random.PRNGKey(0)
    kx, kp = jax.random.split(key)
    B = 2
    x = jax.random.normal(kx, (B, IN_FEATURES), jnp.float32)
    w1, b1, w2, b2 = init_params(kp)

    out = critic_forward(x, w1, b1, w2, b2)
    out = jax.block_until_ready(out)
    assert out.shape == (B, OUT)

    # Reference with the same bf16 casts as the kernel (exact up to accumulation order).
    x_q = x.astype(jnp.bfloat16).astype(jnp.float32)
    w1_q = w1.astype(jnp.bfloat16).astype(jnp.float32)
    ref_q = jnp.maximum(x_q @ w1_q + b1, 0.0) @ w2 + b2
    assert jnp.allclose(out, ref_q, atol=1e-3, rtol=1e-3)

    # Sanity check against the full-f32 PyTorch semantics (bf16 quantization noise only).
    ref_f32 = jnp.maximum(x @ w1 + b1, 0.0) @ w2 + b2
    assert jnp.allclose(out, ref_f32, atol=3e-2, rtol=3e-2)

    print("KERNEL_OK")
</pallas_src>

<mosaic_0001>
module attributes {stable_mosaic.version = 11 : i64} {
  func.func @critic_kernel(%arg0: i32, %arg1: memref<8x1568xbf16, #tpu.memory_space<vmem>>, %arg2: memref<1568x128xbf16, #tpu.memory_space<vmem>>, %arg3: memref<1x128xf32, #tpu.memory_space<vmem>>, %arg4: memref<1x128xf32, #tpu.memory_space<vmem>>, %arg5: memref<1x1xf32, #tpu.memory_space<smem>>, %arg6: memref<8x1xf32, #tpu.memory_space<vmem>>) attributes {dimension_semantics = [#tpu.dimension_semantics<parallel>], iteration_bounds = array<i64: 1>, scalar_prefetch = 0 : i64, scratch_operands = 0 : i64, tpu.core_type = #tpu.core_type<tc>, window_params = [{transform_indices = @transform_0, window_bounds = array<i64: 8, 1568>}, {pipeline_mode = #tpu.pipeline_mode<synchronous>, transform_indices = @transform_1, window_bounds = array<i64: 1568, 128>}, {pipeline_mode = #tpu.pipeline_mode<synchronous>, transform_indices = @transform_2, window_bounds = array<i64: 1, 128>}, {pipeline_mode = #tpu.pipeline_mode<synchronous>, transform_indices = @transform_3, window_bounds = array<i64: 1, 128>}, {transform_indices = @transform_4, window_bounds = array<i64: 1, 1>}, {transform_indices = @transform_5, window_bounds = array<i64: 8, 1>}]} {
    %c0 = arith.constant 0 : index
    %c0_0 = arith.constant 0 : index
    %0 = vector.load %arg1[%c0, %c0_0] : memref<8x1568xbf16, #tpu.memory_space<vmem>>, vector<8x1568xbf16>
    %c0_1 = arith.constant 0 : index
    %c0_2 = arith.constant 0 : index
    %1 = vector.load %arg2[%c0_1, %c0_2] : memref<1568x128xbf16, #tpu.memory_space<vmem>>, vector<1568x128xbf16>
    %cst = arith.constant dense<0.000000e+00> : vector<8x128xf32>
    %2 = tpu.matmul %0, %1, %cst {dimension_numbers = #tpu.dot_dimension_numbers<[1], [0], [0], [1], [0, 0, 1, 1], [], []>} : vector<8x1568xbf16>, vector<1568x128xbf16>, vector<8x128xf32> -> vector<8x128xf32>
    %c0_3 = arith.constant 0 : index
    %c0_4 = arith.constant 0 : index
    %3 = vector.load %arg3[%c0_3, %c0_4] : memref<1x128xf32, #tpu.memory_space<vmem>>, vector<1x128xf32>
    %4 = vector.broadcast %3 : vector<1x128xf32> to vector<8x128xf32>
    %5 = arith.addf %2, %4 : vector<8x128xf32>
    %cst_5 = arith.constant 0.000000e+00 : f32
    %6 = vector.broadcast %cst_5 : f32 to vector<8x128xf32>
    %7 = arith.maximumf %5, %6 : vector<8x128xf32>
    %c0_6 = arith.constant 0 : index
    %c0_7 = arith.constant 0 : index
    %8 = vector.load %arg4[%c0_6, %c0_7] : memref<1x128xf32, #tpu.memory_space<vmem>>, vector<1x128xf32>
    %9 = vector.broadcast %8 : vector<1x128xf32> to vector<8x128xf32>
    %10 = arith.mulf %7, %9 : vector<8x128xf32>
    %cst_8 = arith.constant dense<0.000000e+00> : vector<8xf32>
    %11 = vector.multi_reduction <add>, %10, %cst_8 [1] : vector<8x128xf32> to vector<8xf32>
    %12 = vector.shape_cast %11 : vector<8xf32> to vector<8x1xf32>
    %c0_9 = arith.constant 0 : index
    %c0_10 = arith.constant 0 : index
    %13 = memref.load %arg5[%c0_9, %c0_10] : memref<1x1xf32, #tpu.memory_space<smem>>
    %14 = vector.broadcast %13 : f32 to vector<8x1xf32>
    %15 = arith.addf %12, %14 : vector<8x1xf32>
    %c0_11 = arith.constant 0 : index
    %c0_12 = arith.constant 0 : index
    %16 = vector.load %arg6[%c0_11, %c0_12] : memref<8x1xf32, #tpu.memory_space<vmem>>, vector<8x1xf32>
    tpu.vector_store %arg6[%c0_11, %c0_12], %15 {strides = array<i32>} : memref<8x1xf32, #tpu.memory_space<vmem>>, vector<8x1xf32>,
    return
  }
  func.func @transform_0(%arg0: i32) -> (i32, i32) {
    %c0_i32 = arith.constant 0 : i32
    %c0_i32_0 = arith.constant 0 : i32
    return %arg0, %c0_i32 : i32, i32
  }
  func.func @transform_1(%arg0: i32) -> (i32, i32) {
    %c0_i32 = arith.constant 0 : i32
    %c0_i32_0 = arith.constant 0 : i32
    %c0_i32_1 = arith.constant 0 : i32
    return %c0_i32, %c0_i32_0 : i32, i32
  }
  func.func @transform_2(%arg0: i32) -> (i32, i32) {
    %c0_i32 = arith.constant 0 : i32
    %c0_i32_0 = arith.constant 0 : i32
    %c0_i32_1 = arith.constant 0 : i32
    return %c0_i32, %c0_i32_0 : i32, i32
  }
  func.func @transform_3(%arg0: i32) -> (i32, i32) {
    %c0_i32 = arith.constant 0 : i32
    %c0_i32_0 = arith.constant 0 : i32
    %c0_i32_1 = arith.constant 0 : i32
    return %c0_i32, %c0_i32_0 : i32, i32
  }
  func.func @transform_4(%arg0: i32) -> (i32, i32) {
    %c0_i32 = arith.constant 0 : i32
    %c0_i32_0 = arith.constant 0 : i32
    %c0_i32_1 = arith.constant 0 : i32
    return %c0_i32, %c0_i32_0 : i32, i32
  }
  func.func @transform_5(%arg0: i32) -> (i32, i32) {
    %c0_i32 = arith.constant 0 : i32
    %c0_i32_0 = arith.constant 0 : i32
    return %arg0, %c0_i32 : i32, i32
  }
}

</mosaic_0001>

<bundles_post_ra>
// kernel: tpu_custom_call.1
= control target key start
LH: loop header
LB: loop body
LE: loop exit
PB: predicated region body
PF: predicated region fallthrough
CT: control target
= control target key end

     0   :  { %11 = vsyncpa [#allocation4], 0  ;;  %s1669_s0 = inlined_call_operand.hbm [shape: bf16[8,1568], index: 0, kind: input, shape index: {}]   ;;  %s1670_s1 = inlined_call_operand.hbm [shape: bf16[1568,128], index: 1, kind: input, shape index: {}]   ;;  %s1671_s2 = inlined_call_operand.vmem [shape: f32[1,128], index: 2, kind: input, shape index: {}]   ;;  %s1672_s3 = inlined_call_operand.vmem [shape: f32[1,128], index: 3, kind: input, shape index: {}]   ;;  %s1673_s4 = inlined_call_operand.<no memory space> [shape: f32[1,1], index: 4, kind: input, shape index: {}]   ;;  %s1674_s5 = inlined_call_operand.vmem [shape: f32[8,1], index: 5, kind: output, shape index: {}]  }
   0x1   :  { %12 = vsyncpa [#allocation6], 0  ;;  %s1615_s18 = smov [#allocation3]   ;;  %s1616_s20 = smov [#allocation5]  }
   0x2   :  { %s19_s19 = sshll.u32 %s1615_s18, 4  ;;  %s28_s21 = sshll.u32 %s1616_s20, 4  ;;  %s20_s19 = int_to_ptr.vmem [resolvable:$true] %s19_s19  ;;  %s29_s21 = int_to_ptr.vmem [resolvable:$true] %s28_s21 }
   0x3   :  { %s1579_s22 = scalar_lea.vmem %s20_s19, 832  ;;  %p1584_p1 = scmp.lt.s32.totalorder %s20_s19, %s20_s19 }
   0x4   :  { %p1580_p0 = scmp.ne.s32.totalorder %s20_s19, %s1579_s22  ;;  %p1585_p2 = scmp.lt.s32.totalorder %s1579_s22, %s1579_s22 }
   0x6   :  { %p1586_p3 = por %p1585_p2, %p1584_p1 }
   0x8   :  { %p1587_p4 = pnand %p1586_p3, %p1580_p0 }
   0xa   :  { %1590 = shalt.err (!%p1587_p4)
}
   0xb   :  { %22 = dma.hbm_to_vmem [thread:$0]  %s1669_s0, 832, %s20_s19, [#allocation4]  }
   0xc   :  { %s1599_s25 = scalar_lea.vmem %s29_s21, 12544  ;;  %p1604_p6 = scmp.lt.s32.totalorder %s29_s21, %s29_s21 }
   0xd   :  { %p1600_p5 = scmp.ne.s32.totalorder %s29_s21, %s1599_s25  ;;  %p1605_p7 = scmp.lt.s32.totalorder %s1599_s25, %s1599_s25 }
   0xf   :  { %p1606_p8 = por %p1605_p7, %p1604_p6 }
  0x11   :  { %p1607_p9 = pnand %p1606_p8, %p1600_p5 }
  0x13   :  { %1610 = shalt.err (!%p1607_p9)
}
  0x14   :  { %s1617_s26 = smov 64   ;;  %s1618_s27 = smov 4  }
  0x15   :  { %34 = dma.hbm_to_vmem [thread:$0]  %s1670_s1, 12544, %s29_s21, [#allocation6], %s1617_s26, %s1617_s26, %s1618_s27  }
  0x16   :  { %1611 = dma.done.wait [#allocation4], 832  }
  0x17   :  { %1612 = vsyncadd [#allocation4], 4294966464 }
  0x18   :  { %1613 = dma.done.wait [#allocation6], 12544  }
  0x19   :  { %1614 = vsyncadd [#allocation6], 4294954752  ;;  %v1460_v0 = vld [vmem:[#allocation5 + $0x78] sm:$0xff]   ;;  %v1464_v4 = vld [vmem:[#allocation5 + $0x70] sm:$0xff]   ;;  %vm1620_vm0 = vmmov 0   ;;  %vm891_vm1 = vcmask 261120  }
  0x1a   :  { %v1461_v1 = vld [vmem:[#allocation5 + $0xf8] sm:$0xff]   ;;  %1311 = vmatprep.subr.bf16.mxu0 %v1460_v0  ;;  %v1465_v5 = vld [vmem:[#allocation5 + $0xf0] sm:$0xff]   ;;  %v1468_v8 = vld [vmem:[#allocation5 + $0x68] sm:$0xff]   ;;  %vm1189_vm2 = vcmask 7168  }
  0x1b   :  { %v1462_v2 = vld [vmem:[#allocation5 + $0x38] sm:$0xff]   ;;  %1333 = vmatprep.subr.bf16.mxu1 %v1461_v1  ;;  %v1466_v6 = vld [vmem:[#allocation5 + $0x30] sm:$0xff]   ;;  %v1469_v9 = vld [vmem:[#allocation5 + $0xe8] sm:$0xff]  }
  0x1c   :  { %v1463_v3 = vld [vmem:[#allocation5 + $0xb8] sm:$0xff]   ;;  %1312 = vmatpush3.bf16.msra.mxu0 %v1462_v2  ;;  %v1467_v7 = vld [vmem:[#allocation5 + $0xb0] sm:$0xff]   ;;  %v1470_v10 = vld [vmem:[#allocation5 + $0x28] sm:$0xff]  }
  0x1d   :  { %1334 = vmatpush3.bf16.msra.mxu1 %v1463_v3  ;;  %1313 = vmatprep.subr.bf16.mxu0 %v1464_v4  ;;  %v1471_v11 = vld [vmem:[#allocation5 + $0xa8] sm:$0xff]   ;;  %v1472_v12 = vld [vmem:[#allocation5 + $0x60] sm:$0xff]   ;;  %v1476_v16 = vld [vmem:[#allocation5 + $0x58] sm:$0xff]  }
  0x1e   :  { %1335 = vmatprep.subr.bf16.mxu1 %v1465_v5  ;;  %v1473_v13 = vld [vmem:[#allocation5 + $0xe0] sm:$0xff]   ;;  %v1477_v17 = vld [vmem:[#allocation5 + $0xd8] sm:$0xff]   ;;  %v1480_v20 = vld [vmem:[#allocation5 + $0x50] sm:$0xff]  }
  0x1f   :  { %v1474_v14 = vld [vmem:[#allocation5 + $0x20] sm:$0xff]   ;;  %v1478_v18 = vld [vmem:[#allocation5 + $0x18] sm:$0xff]   ;;  %v1481_v21 = vld [vmem:[#allocation5 + $0xd0] sm:$0xff]  }
  0x20   :  { %1314 = vmatpush3.bf16.msra.mxu0 %v1466_v6  ;;  %v1475_v15 = vld [vmem:[#allocation5 + $0xa0] sm:$0xff]   ;;  %v1479_v19 = vld [vmem:[#allocation5 + $0x98] sm:$0xff]   ;;  %v1482_v22 = vld [vmem:[#allocation5 + $0x10] sm:$0xff]  }
  0x21   :  { %1336 = vmatpush3.bf16.msra.mxu1 %v1467_v7  ;;  %1315 = vmatprep.subr.bf16.mxu0 %v1468_v8  ;;  %v1483_v23 = vld [vmem:[#allocation5 + $0x90] sm:$0xff]   ;;  %v1484_v24 = vld [vmem:[#allocation5 + $0x48] sm:$0xff]   ;;  %v1488_v28 = vld [vmem:[#allocation5 + $0x40] sm:$0xff]  }
  0x22   :  { %1337 = vmatprep.subr.bf16.mxu1 %v1469_v9  ;;  %v1485_v25 = vld [vmem:[#allocation5 + $0xc8] sm:$0xff]   ;;  %v1489_v29 = vld [vmem:[#allocation5 + $0xc0] sm:$0xff]   ;;  %v49_v33 = vld [vmem:[#allocation3 + $0x8] sm:$0xff] }
  0x23   :  { %v1486_v26 = vld [vmem:[#allocation5 + $0x8] sm:$0xff]   ;;  %v1490_v30 = vld [vmem:[#allocation5] sm:$0xff]   ;;  %v1200_v36 = vcombine.low %v49_v33, %v49_v33  ;;  %v1201_v37 = vcombine.high %v49_v33, %v49_v33  ;;  %v1496_v38 = vld [vmem:[#allocation5 + $0x178] sm:$0xff]  }
  0x24   :  { %1316 = vmatpush3.bf16.msra.mxu0 %v1470_v10  ;;  %v1487_v27 = vld [vmem:[#allocation5 + $0x88] sm:$0xff]   ;;  %v1491_v31 = vld [vmem:[#allocation5 + $0x80] sm:$0xff]   ;;  %v1497_v39 = vld [vmem:[#allocation5 + $0x1f8] sm:$0xff]  }
  0x25   :  { %1338 = vmatpush3.bf16.msra.mxu1 %v1471_v11  ;;  %1317 = vmatprep.subr.bf16.mxu0 %v1472_v12  ;;  %v48_v32 = vld [vmem:[#allocation3] sm:$0xff]  ;;  %v1498_v40 = vld [vmem:[#allocation5 + $0x138] sm:$0xff]   ;;  %v1508_v50 = vld [vmem:[#allocation5 + $0x160] sm:$0xff]  }
  0x26   :  { %1339 = vmatprep.subr.bf16.mxu1 %v1473_v13  ;;  %v1198_v34 = vcombine.low %v48_v32, %v48_v32  ;;  %v1199_v35 = vcombine.high %v48_v32, %v48_v32  ;;  %967 = vmatprep.mubr.bf16.mxu1 %v1201_v37  ;;  %v1499_v41 = vld [vmem:[#allocation5 + $0x1b8] sm:$0xff]   ;;  %v1500_v42 = vld [vmem:[#allocation5 + $0x170] sm:$0xff]   ;;  %v1504_v46 = vld [vmem:[#allocation5 + $0x168] sm:$0xff]  }
  0x27   :  { %v1501_v43 = vld [vmem:[#allocation5 + $0x1f0] sm:$0xff]   ;;  %v1505_v47 = vld [vmem:[#allocation5 + $0x1e8] sm:$0xff]   ;;  %v1509_v51 = vld [vmem:[#allocation5 + $0x1e0] sm:$0xff]  }
  0x28   :  { %1318 = vmatpush3.bf16.msra.mxu0 %v1474_v14  ;;  %927 = vmatprep.mubr.bf16.mxu0 %v1199_v35  ;;  %v1502_v44 = vld [vmem:[#allocation5 + $0x130] sm:$0xff]   ;;  %v1506_v48 = vld [vmem:[#allocation5 + $0x128] sm:$0xff]   ;;  %v1510_v52 = vld [vmem:[#allocation5 + $0x120] sm:$0xff]  }
  0x29   :  { %1340 = vmatpush3.bf16.msra.mxu1 %v1475_v15  ;;  %1319 = vmatprep.subr.bf16.mxu0 %v1476_v16  ;;  %v1503_v45 = vld [vmem:[#allocation5 + $0x1b0] sm:$0xff]   ;;  %v1507_v49 = vld [vmem:[#allocation5 + $0x1a8] sm:$0xff]   ;;  %v1511_v53 = vld [vmem:[#allocation5 + $0x1a0] sm:$0xff]  }
  0x2a   :  { %1341 = vmatprep.subr.bf16.mxu1 %v1477_v17  ;;  %v1512_v54 = vld [vmem:[#allocation5 + $0x158] sm:$0xff]   ;;  %v1516_v58 = vld [vmem:[#allocation5 + $0x150] sm:$0xff]   ;;  %v1520_v62 = vld [vmem:[#allocation5 + $0x148] sm:$0xff]  }
  0x2b   :  { %v1513_v55 = vld [vmem:[#allocation5 + $0x1d8] sm:$0xff]   ;;  %v1517_v59 = vld [vmem:[#allocation5 + $0x1d0] sm:$0xff]   ;;  %v1521_v63 = vld [vmem:[#allocation5 + $0x1c8] sm:$0xff]  }
  0x2c   :  { %1320 = vmatpush3.bf16.msra.mxu0 %v1478_v18  ;;  %v1514_v56 = vld [vmem:[#allocation5 + $0x118] sm:$0xff]   ;;  %v1518_v60 = vld [vmem:[#allocation5 + $0x110] sm:$0xff]   ;;  %v1522_v0 = vld [vmem:[#allocation5 + $0x108] sm:$0xff]  }
  0x2d   :  { %1342 = vmatpush3.bf16.msra.mxu1 %v1479_v19  ;;  %1321 = vmatprep.subr.bf16.mxu0 %v1480_v20  ;;  %v1515_v57 = vld [vmem:[#allocation5 + $0x198] sm:$0xff]   ;;  %v1519_v61 = vld [vmem:[#allocation5 + $0x190] sm:$0xff]   ;;  %v1523_v1 = vld [vmem:[#allocation5 + $0x188] sm:$0xff]  }
  0x2e   :  { %1343 = vmatprep.subr.bf16.mxu1 %v1481_v21  ;;  %v1524_v2 = vld [vmem:[#allocation5 + $0x140] sm:$0xff]   ;;  %v1532_v12 = vld [vmem:[#allocation5 + $0x278] sm:$0xff]   ;;  %v1536_v16 = vld [vmem:[#allocation5 + $0x270] sm:$0xff]  }
  0x2f   :  { %v1525_v3 = vld [vmem:[#allocation5 + $0x1c0] sm:$0xff]   ;;  %v1533_v13 = vld [vmem:[#allocation5 + $0x2f8] sm:$0xff]   ;;  %v1537_v17 = vld [vmem:[#allocation5 + $0x2f0] sm:$0xff]  }
  0x30   :  { %1322 = vmatpush3.bf16.msra.mxu0 %v1482_v22  ;;  %v1526_v4 = vld [vmem:[#allocation5 + $0x100] sm:$0xff]   ;;  %v1534_v14 = vld [vmem:[#allocation5 + $0x238] sm:$0xff]   ;;  %v1538_v18 = vld [vmem:[#allocation5 + $0x230] sm:$0xff]  }
  0x31   :  { %1344 = vmatpush3.bf16.msra.mxu1 %v1483_v23  ;;  %1323 = vmatprep.subr.bf16.mxu0 %v1484_v24  ;;  %v1527_v5 = vld [vmem:[#allocation5 + $0x180] sm:$0xff]   ;;  %v1535_v15 = vld [vmem:[#allocation5 + $0x2b8] sm:$0xff]   ;;  %v1539_v19 = vld [vmem:[#allocation5 + $0x2b0] sm:$0xff]  }
  0x32   :  { %1345 = vmatprep.subr.bf16.mxu1 %v1485_v25  ;;  %v50_v6 = vld [vmem:[#allocation3 + $0x10] sm:$0xff]  ;;  %v51_v9 = vld [vmem:[#allocation3 + $0x18] sm:$0xff]  ;;  %v1552_v32 = vld [vmem:[#allocation5 + $0x250] sm:$0xff]  }
  0x33   :  { %v1202_v7 = vcombine.low %v50_v6, %v50_v6  ;;  %v1203_v8 = vcombine.high %v50_v6, %v50_v6  ;;  %v1204_v10 = vcombine.low %v51_v9, %v51_v9  ;;  %v1205_v11 = vcombine.high %v51_v9, %v51_v9  ;;  %v1540_v20 = vld [vmem:[#allocation5 + $0x268] sm:$0xff]   ;;  %v1544_v24 = vld [vmem:[#allocation5 + $0x260] sm:$0xff]   ;;  %v1553_v33 = vld [vmem:[#allocation5 + $0x2d0] sm:$0xff]  }
  0x34   :  { %1324 = vmatpush3.bf16.msra.mxu0 %v1486_v26  ;;  %v1541_v21 = vld [vmem:[#allocation5 + $0x2e8] sm:$0xff]   ;;  %v1545_v25 = vld [vmem:[#allocation5 + $0x2e0] sm:$0xff]   ;;  %v1555_v35 = vld [vmem:[#allocation5 + $0x290] sm:$0xff]  }
  0x35   :  { %1346 = vmatpush3.bf16.msra.mxu1 %v1487_v27  ;;  %1325 = vmatprep.subr.bf16.mxu0 %v1488_v28  ;;  %v1542_v22 = vld [vmem:[#allocation5 + $0x228] sm:$0xff]   ;;  %v1546_v26 = vld [vmem:[#allocation5 + $0x220] sm:$0xff]   ;;  %v1548_v28 = vld [vmem:[#allocation5 + $0x258] sm:$0xff]  }
  0x36   :  { %1347 = vmatprep.subr.bf16.mxu1 %v1489_v29  ;;  %v1543_v23 = vld [vmem:[#allocation5 + $0x2a8] sm:$0xff]   ;;  %v1547_v27 = vld [vmem:[#allocation5 + $0x2a0] sm:$0xff]   ;;  %v1549_v29 = vld [vmem:[#allocation5 + $0x2d8] sm:$0xff]  }
  0x37   :  { %v1557_v37 = vld [vmem:[#allocation5 + $0x2c8] sm:$0xff]  }
  0x38   :  { %1326 = vmatpush3.bf16.msra.mxu0 %v1490_v30  ;;  %v1550_v30 = vld [vmem:[#allocation5 + $0x218] sm:$0xff]  }
  0x39   :  { %1348 = vmatpush3.bf16.msra.mxu1 %v1491_v31  ;;  %1355 = vmatprep.subr.bf16.mxu0 %v1496_v38  ;;  %v1551_v31 = vld [vmem:[#allocation5 + $0x298] sm:$0xff]   ;;  %v1558_v38 = vld [vmem:[#allocation5 + $0x208] sm:$0xff]  }
  0x3a   :  { %1377 = vmatprep.subr.bf16.mxu1 %v1497_v39  ;;  %v1559_v39 = vld [vmem:[#allocation5 + $0x288] sm:$0xff]  }
  0x3b   :  { %928 = vmatmul.mubr.bf16.vlgmr.msra.gmra.mxu0 %v1198_v34  ;;  %v1554_v34 = vld [vmem:[#allocation5 + $0x210] sm:$0xff]  }
  0x3c   :  { %968 = vmatmul.mubr.bf16.vlgmr.msra.gmra.mxu1 %v1200_v36  ;;  %1356 = vmatpush3.bf16.msra.mxu0 %v1498_v40  ;;  %v1556_v36 = vld [vmem:[#allocation5 + $0x248] sm:$0xff]   ;;  %v1560_v40 = vld [vmem:[#allocation5 + $0x240] sm:$0xff]  }
  0x3d   :  { %1378 = vmatpush3.bf16.msra.mxu1 %v1499_v41  ;;  %1357 = vmatprep.subr.bf16.mxu0 %v1500_v42  ;;  %v1561_v41 = vld [vmem:[#allocation5 + $0x2c0] sm:$0xff]  }
  0x3e   :  { %1379 = vmatprep.subr.bf16.mxu1 %v1501_v43  ;;  %1007 = vmatprep.mubr.bf16.mxu0 %v1203_v8  ;;  %v1562_v42 = vld [vmem:[#allocation5 + $0x200] sm:$0xff]  }
  0x3f   :  { %1047 = vmatprep.mubr.bf16.mxu1 %v1205_v11  ;;  %v1563_v43 = vld [vmem:[#allocation5 + $0x280] sm:$0xff]  }
  0x40   :  { %1358 = vmatpush3.bf16.msra.mxu0 %v1502_v44  ;;  %v52_v44 = vld [vmem:[#allocation3 + $0x20] sm:$0xff] }
  0x41   :  { %1380 = vmatpush3.bf16.msra.mxu1 %v1503_v45  ;;  %1359 = vmatprep.subr.bf16.mxu0 %v1504_v46  ;;  %v53_v45 = vld [vmem:[#allocation3 + $0x28] sm:$0xff]  ;;  %v1206_v46 = vcombine.low %v52_v44, %v52_v44 }
  0x42   :  { %1381 = vmatprep.subr.bf16.mxu1 %v1505_v47  ;;  %v1207_v47 = vcombine.high %v52_v44, %v52_v44 }
  0x44   :  { %1360 = vmatpush3.bf16.msra.mxu0 %v1506_v48  ;;  %v1208_v48 = vcombine.low %v53_v45, %v53_v45 }
  0x45   :  { %1382 = vmatpush3.bf16.msra.mxu1 %v1507_v49  ;;  %1361 = vmatprep.subr.bf16.mxu0 %v1508_v50  ;;  %v1209_v49 = vcombine.high %v53_v45, %v53_v45  ;;  %v1568_v50 = vld [vmem:[#allocation5 + $0x308] sm:$0xff]  }
  0x46   :  { %1383 = vmatprep.subr.bf16.mxu1 %v1509_v51  ;;  %v1619_v51 = vmov 0.0  }
  0x48   :  { %1362 = vmatpush3.bf16.msra.mxu0 %v1510_v52  ;;  %v1569_v52 = vld [vmem:[#allocation5 + $0x300] sm:$0xff]  }
  0x49   :  { %1384 = vmatpush3.bf16.msra.mxu1 %v1511_v53  ;;  %1363 = vmatprep.subr.bf16.mxu0 %v1512_v54  ;;  %v1570_v53 = vld [vmem:[#allocation3 + $0x30] ss:$0 sps:$4 sm:$0xff]  }
  0x4a   :  { %1385 = vmatprep.subr.bf16.mxu1 %v1513_v55 }
  0x4c   :  { %1364 = vmatpush3.bf16.msra.mxu0 %v1514_v56 }
  0x4d   :  { %1386 = vmatpush3.bf16.msra.mxu1 %v1515_v57  ;;  %1365 = vmatprep.subr.bf16.mxu0 %v1516_v58 }
  0x4e   :  { %1387 = vmatprep.subr.bf16.mxu1 %v1517_v59 }
  0x50   :  { %1366 = vmatpush3.bf16.msra.mxu0 %v1518_v60 }
  0x51   :  { %1388 = vmatpush3.bf16.msra.mxu1 %v1519_v61  ;;  %1367 = vmatprep.subr.bf16.mxu0 %v1520_v62 }
  0x52   :  { %1389 = vmatprep.subr.bf16.mxu1 %v1521_v63 }
  0x54   :  { %1368 = vmatpush3.bf16.msra.mxu0 %v1522_v0 }
  0x55   :  { %1390 = vmatpush3.bf16.msra.mxu1 %v1523_v1  ;;  %1369 = vmatprep.subr.bf16.mxu0 %v1524_v2 }
  0x56   :  { %1391 = vmatprep.subr.bf16.mxu1 %v1525_v3 }
  0x58   :  { %1370 = vmatpush3.bf16.msra.mxu0 %v1526_v4 }
  0x59   :  { %1392 = vmatpush3.bf16.msra.mxu1 %v1527_v5  ;;  %1399 = vmatprep.subr.bf16.mxu0 %v1532_v12 }
  0x5a   :  { %1421 = vmatprep.subr.bf16.mxu1 %v1533_v13 }
  0x5b   :  { %1008 = vmatmul.mubr.bf16.vlgmr.msra.gmra.mxu0 %v1202_v7  ;;  %v1197_v7 = vld [vmem:[%s1671_s2] ss:$0 sm:$0xff] }
  0x5c   :  { %1048 = vmatmul.mubr.bf16.vlgmr.msra.gmra.mxu1 %v1204_v10  ;;  %1400 = vmatpush3.bf16.msra.mxu0 %v1534_v14 }
  0x5d   :  { %1422 = vmatpush3.bf16.msra.mxu1 %v1535_v15  ;;  %1401 = vmatprep.subr.bf16.mxu0 %v1536_v16 }
  0x5e   :  { %1423 = vmatprep.subr.bf16.mxu1 %v1537_v17  ;;  %1087 = vmatprep.mubr.bf16.mxu0 %v1207_v47 }
  0x5f   :  { %1127 = vmatprep.mubr.bf16.mxu1 %v1209_v49 }
  0x60   :  { %1402 = vmatpush3.bf16.msra.mxu0 %v1538_v18 }
  0x61   :  { %1424 = vmatpush3.bf16.msra.mxu1 %v1539_v19  ;;  %1403 = vmatprep.subr.bf16.mxu0 %v1540_v20 }
  0x62   :  { %1425 = vmatprep.subr.bf16.mxu1 %v1541_v21 }
  0x64   :  { %1404 = vmatpush3.bf16.msra.mxu0 %v1542_v22 }
  0x65   :  { %1426 = vmatpush3.bf16.msra.mxu1 %v1543_v23  ;;  %1405 = vmatprep.subr.bf16.mxu0 %v1544_v24 }
  0x66   :  { %1427 = vmatprep.subr.bf16.mxu1 %v1545_v25 }
  0x68   :  { %1406 = vmatpush3.bf16.msra.mxu0 %v1546_v26 }
  0x69   :  { %1428 = vmatpush3.bf16.msra.mxu1 %v1547_v27  ;;  %1407 = vmatprep.subr.bf16.mxu0 %v1548_v28 }
  0x6a   :  { %1429 = vmatprep.subr.bf16.mxu1 %v1549_v29 }
  0x6c   :  { %1408 = vmatpush3.bf16.msra.mxu0 %v1550_v30  ;;  %v1310_v30 = vld [vmem:[%s1672_s3] ss:$0 sm:$0xff] }
  0x6d   :  { %1430 = vmatpush3.bf16.msra.mxu1 %v1551_v31  ;;  %1409 = vmatprep.subr.bf16.mxu0 %v1552_v32 }
  0x6e   :  { %1431 = vmatprep.subr.bf16.mxu1 %v1553_v33 }
  0x70   :  { %1410 = vmatpush3.bf16.msra.mxu0 %v1554_v34 }
  0x71   :  { %1432 = vmatpush3.bf16.msra.mxu1 %v1555_v35  ;;  %1411 = vmatprep.subr.bf16.mxu0 %v1556_v36  ;;  %v1187_v35 = vstv %s1673_s4 }
  0x72   :  { %1433 = vmatprep.subr.bf16.mxu1 %v1557_v37 }
  0x74   :  { %1412 = vmatpush3.bf16.msra.mxu0 %v1558_v38 }
  0x75   :  { %1434 = vmatpush3.bf16.msra.mxu1 %v1559_v39  ;;  %1413 = vmatprep.subr.bf16.mxu0 %v1560_v40 }
  0x76   :  { %1435 = vmatprep.subr.bf16.mxu1 %v1561_v41 }
  0x78   :  { %1414 = vmatpush3.bf16.msra.mxu0 %v1562_v42 }
  0x79   :  { %1436 = vmatpush3.bf16.msra.mxu1 %v1563_v43  ;;  %1446 = vmatprep.subr.bf16.mxu0 %v1619_v51 }
  0x7b   :  { %1088 = vmatmul.mubr.bf16.vlgmr.msra.gmra.mxu0 %v1206_v46 }
  0x7c   :  { %1128 = vmatmul.mubr.bf16.vlgmr.msra.gmra.mxu1 %v1208_v48  ;;  %1447 = vmatpush3.bf16.msra.mxu0 %v1568_v50 }
  0x7d   :  { %1448 = vmatprep.subr.bf16.mxu0 %v1619_v51  ;;  %1450 = vmatprep.mubr.msk.bf16.mxu0 %vm1620_vm0, %v1619_v51 }
  0x80   :  { %1449 = vmatpush3.bf16.msra.mxu0 %v1569_v52 }
  0x83   :  { %1451 = vmatmul.mubr.msk.bf16.vlgmr.msra.gmra.mxu0 %vm891_vm1, %v1570_v53 }
  0xfb   :  { %v1327_v54 = vpop.f32.mrf.mxu0 }
  0xfc   :  { %v1349_v55 = vpop.f32.mrf.mxu1 }
  0xfd   :  { %v1328_v56 = vpop.f32.mrf.mxu0 }
  0xfe   :  { %v1350_v57 = vpop.f32.mrf.mxu1  ;;  %v1329_v6 = vadd.f32 %v1328_v56, %v1327_v54 }
  0xff   :  { %v1330_v58 = vpop.f32.mrf.mxu0  ;;  %v1351_v9 = vadd.f32 %v1350_v57, %v1349_v55 }
 0x100   :  { %v1352_v59 = vpop.f32.mrf.mxu1  ;;  %v930_v8 = vadd.f32 %v1329_v6, %v1197_v7 }
 0x101   :  { %v1331_v60 = vpop.f32.mrf.mxu0 }
 0x102   :  { %v1353_v61 = vpop.f32.mrf.mxu1  ;;  %v970_v11 = vadd.f32 %v1351_v9, %v930_v8 }
 0x11b   :  { %v1371_v62 = vpop.f32.mrf.mxu0 }
 0x11c   :  { %v1393_v63 = vpop.f32.mrf.mxu1 }
 0x11d   :  { %v1372_v0 = vpop.f32.mrf.mxu0 }
 0x11e   :  { %v1394_v1 = vpop.f32.mrf.mxu1  ;;  %v1373_v10 = vadd.f32 %v1372_v0, %v1371_v62 }
 0x11f   :  { %v1374_v2 = vpop.f32.mrf.mxu0  ;;  %v1395_v13 = vadd.f32 %v1394_v1, %v1393_v63 }
 0x120   :  { %v1396_v3 = vpop.f32.mrf.mxu1  ;;  %v1010_v12 = vadd.f32 %v1373_v10, %v970_v11 }
 0x121   :  { %v1375_v4 = vpop.f32.mrf.mxu0 }
 0x122   :  { %v1397_v5 = vpop.f32.mrf.mxu1  ;;  %v1050_v17 = vadd.f32 %v1395_v13, %v1010_v12 }
 0x13b   :  { %v1415_v14 = vpop.f32.mrf.mxu0 }
 0x13c   :  { %v1437_v15 = vpop.f32.mrf.mxu1 }
 0x13d   :  { %v1416_v16 = vpop.f32.mrf.mxu0 }
 0x13e   :  { %v1417_v18 = vadd.f32 %v1416_v16, %v1415_v14  ;;  %v1438_v19 = vpop.f32.mrf.mxu1 }
 0x13f   :  { %v1418_v20 = vpop.f32.mrf.mxu0  ;;  %v1439_v22 = vadd.f32 %v1438_v19, %v1437_v15 }
 0x140   :  { %v1090_v21 = vadd.f32 %v1417_v18, %v1050_v17  ;;  %v1440_v23 = vpop.f32.mrf.mxu1 }
 0x141   :  { %v1419_v24 = vpop.f32.mrf.mxu0 }
 0x142   :  { %v1441_v25 = vpop.f32.mrf.mxu1  ;;  %v1130_v26 = vadd.f32 %v1439_v22, %v1090_v21 }
 0x143   :  { %v1169_v27 = vpop.f32.mrf.mxu0 }
 0x144   :  { %v1170_v28 = vadd.f32 %v1169_v27, %v1130_v26 }
 0x145   :  { %v1452_v29 = vpop.f32.mrf.mxu0 }
 0x146   :  { %v1175_v31 = vmax.f32 %v1170_v28, 0.0 }
 0x147   :  { %v1172_v32 = vpop.f32.mrf.mxu0 }
 0x148   :  { %v1183_v33 = vmul.f32 %v1310_v30, %v1175_v31 }
 0x149   :  { %v1453_v34 = vpop.f32.mrf.mxu0 }
 0x14a   :  { %1184 = vadd.xlane.f32.xlu0 %v1183_v33 }
 0x1d3   :  { %v1185_v36 = vpop.xlane.xlu0 %1184 }
 0x1d4   :  { %v1188_v37 = vadd.f32 %v1187_v35, %v1185_v36 }
 0x1d6   :  { %1190 = vst.msk [vmem:[%s1674_s5] sm:$0xff] %vm1189_vm2, %v1188_v37 }
 0x1d7   :  { %1195 = vsyncpa [#allocation4], 1 }
 0x1d8   :  { %1196 = vsyncpa [#allocation6], 1 }

</bundles_post_ra>
